<compile_context>
chip_gen: v7x
topology: tpu7x:2x2x1
jax: 0.10.0
libtpu: 0.0.40
codegen_flags: <defaults>
</compile_context>

<pallas_src>
import jax
import jax.numpy as jnp
from jax.experimental import pallas as pl
from jax.experimental.pallas import tpu as pltpu


def _bias_add_kernel(x_ref, b_ref, o_ref):
    # x_ref: (tb, Np) tile of the input; b_ref: (1, Np) bias row, resident
    # across all grid steps (constant index_map). Pure VPU elementwise add.
    o_ref[...] = x_ref[...] + b_ref[...]


# Live VMEM of the pipelined blocks ~= 4 * tb * Np * itemsize
#   (x block double-buffered + out block double-buffered; bias row is negligible).
# 32 MiB keeps full double-buffering with headroom on v7x (64 MiB physical VMEM)
# while still giving 8 MiB-scale x blocks on v5e/v6e.
_BLOCK_VMEM_BUDGET = 32 << 20   # bytes of live, double-buffered block data
_VMEM_LIMIT_BYTES = 64 << 20    # raise scoped VMEM above 16 MiB (v5e) / 32 MiB defaults


def _choose_tb(B: int, Np: int, itemsize: int) -> int:
    """Pick the batch tile from a byte budget (sublane-multiple, lane-dense)."""
    per_buffer = _BLOCK_VMEM_BUDGET // 4            # one copy of one (tb, Np) block
    tb = per_buffer // (Np * itemsize)
    tb = max(8, (tb // 8) * 8)                      # sublane (8) multiple
    if tb >= B:
        total_bytes = B * Np * itemsize
        if total_bytes >= (4 << 20) and B >= 16:
            # Whole array would fit one block but is big enough to benefit from
            # >=2 grid steps (v7x has 2 TensorCores sharing HBM).
            half = -(-B // 2)
            tb = max(8, ((half + 7) // 8) * 8)
        else:
            tb = B                                  # tiny input: single full block
    return tb


def bias_forward(x: jax.Array, bias: jax.Array, *, donate_x: bool = False) -> jax.Array:
    """x: (..., N), bias: (N,). Returns x + bias (PyTorch broadcast semantics)."""
    orig_shape = x.shape
    N = orig_shape[-1]
    assert bias.shape == (N,), "bias must match the trailing feature dim"

    # Flatten leading dims so the kernel sees a lane-dense 2-D slab.
    B = 1
    for d in orig_shape[:-1]:
        B *= d
    x2 = x.reshape(B, N)
    b2 = bias.reshape(1, N)

    # Lane-dense last dim: pad N up to a multiple of 128 so the output stores
    # are unmasked full-width vst (biggest single lever measured for this kind
    # of kernel). Glue padding/slicing stays in plain JAX.
    Np = ((N + 127) // 128) * 128
    pad = Np - N
    if pad:
        x2 = jnp.pad(x2, ((0, 0), (0, pad)))
        b2 = jnp.pad(b2, ((0, 0), (0, pad)))

    itemsize = jnp.dtype(x.dtype).itemsize
    tb = _choose_tb(B, Np, itemsize)
    grid = (pl.cdiv(B, tb),)   # uneven tail block is masked automatically

    kwargs = {}
    if donate_x and pad == 0:
        # Output has identical shape/dtype; reuse x's HBM buffer (no second B*N alloc).
        kwargs["input_output_aliases"] = {0: 0}

    out = pl.pallas_call(
        _bias_add_kernel,
        out_shape=jax.ShapeDtypeStruct((B, Np), x.dtype),
        grid_spec=pltpu.PrefetchScalarGridSpec(
            num_scalar_prefetch=0,
            grid=grid,
            in_specs=[
                pl.BlockSpec((tb, Np), lambda i: (i, 0)),   # batch tile of x
                pl.BlockSpec((1, Np), lambda i: (0, 0)),    # resident bias row
            ],
            out_specs=pl.BlockSpec((tb, Np), lambda i: (i, 0)),
        ),
        compiler_params=pltpu.CompilerParams(
            dimension_semantics=("parallel",),
            vmem_limit_bytes=_VMEM_LIMIT_BYTES,
        ),
        **kwargs,
    )(x2, b2)

    if pad:
        out = out[:, :N]
    return out.reshape(orig_shape)


if __name__ == "__main__":
    key = jax.random.PRNGKey(0)

    # Small shape consistent with the module's usage on flattened policy logits.
    B, N = 8, 256
    kx, kb = jax.random.split(key)
    x = jax.random.normal(kx, (B, N), dtype=jnp.float32)
    # nn.Parameter(torch.zeros(shape)) is zero-init; use nonzero values so the
    # broadcast add is actually exercised.
    bias = 0.1 * jax.random.normal(kb, (N,), dtype=jnp.float32)

    out = jax.block_until_ready(bias_forward(x, bias))
    ref = x + bias[None, :]
    assert out.shape == x.shape and out.dtype == x.dtype
    assert jnp.allclose(out, ref, atol=1e-6, rtol=1e-6)

    # Second tiny check: non-multiple-of-128 feature width (exercises the lane
    # padding path) and a 3-D input whose leading dims are flattened.
    B2, S2, N2 = 2, 4, 200
    kx2, kb2 = jax.random.split(kb)
    x3 = jax.random.normal(kx2, (B2, S2, N2), dtype=jnp.float32)
    bias3 = 0.1 * jax.random.normal(kb2, (N2,), dtype=jnp.float32)
    out3 = jax.block_until_ready(bias_forward(x3, bias3))
    ref3 = x3 + bias3
    assert out3.shape == x3.shape
    assert jnp.allclose(out3, ref3, atol=1e-6, rtol=1e-6)

    print("KERNEL_OK")
</pallas_src>

<mosaic_0001>
module attributes {stable_mosaic.version = 11 : i64} {
  func.func @_bias_add_kernel(%arg0: i32, %arg1: memref<8x256xf32, #tpu.memory_space<vmem>>, %arg2: memref<1x256xf32, #tpu.memory_space<vmem>>, %arg3: memref<8x256xf32, #tpu.memory_space<vmem>>) attributes {dimension_semantics = [#tpu.dimension_semantics<parallel>], iteration_bounds = array<i64: 1>, scalar_prefetch = 0 : i64, scratch_operands = 0 : i64, tpu.core_type = #tpu.core_type<tc>, window_params = [{transform_indices = @transform_0, window_bounds = array<i64: 8, 256>}, {pipeline_mode = #tpu.pipeline_mode<synchronous>, transform_indices = @transform_1, window_bounds = array<i64: 1, 256>}, {transform_indices = @transform_2, window_bounds = array<i64: 8, 256>}]} {
    %c0 = arith.constant 0 : index
    %c0_0 = arith.constant 0 : index
    %0 = vector.load %arg1[%c0, %c0_0] : memref<8x256xf32, #tpu.memory_space<vmem>>, vector<8x256xf32>
    %c0_1 = arith.constant 0 : index
    %c0_2 = arith.constant 0 : index
    %1 = vector.load %arg2[%c0_1, %c0_2] : memref<1x256xf32, #tpu.memory_space<vmem>>, vector<1x256xf32>
    %2 = vector.broadcast %1 : vector<1x256xf32> to vector<8x256xf32>
    %3 = arith.addf %0, %2 : vector<8x256xf32>
    %c0_3 = arith.constant 0 : index
    %c0_4 = arith.constant 0 : index
    %4 = vector.load %arg3[%c0_3, %c0_4] : memref<8x256xf32, #tpu.memory_space<vmem>>, vector<8x256xf32>
    tpu.vector_store %arg3[%c0_3, %c0_4], %3 {strides = array<i32>} : memref<8x256xf32, #tpu.memory_space<vmem>>, vector<8x256xf32>,
    return
  }
  func.func @transform_0(%arg0: i32) -> (i32, i32) {
    %c0_i32 = arith.constant 0 : i32
    %c0_i32_0 = arith.constant 0 : i32
    return %arg0, %c0_i32 : i32, i32
  }
  func.func @transform_1(%arg0: i32) -> (i32, i32) {
    %c0_i32 = arith.constant 0 : i32
    %c0_i32_0 = arith.constant 0 : i32
    %c0_i32_1 = arith.constant 0 : i32
    return %c0_i32, %c0_i32_0 : i32, i32
  }
  func.func @transform_2(%arg0: i32) -> (i32, i32) {
    %c0_i32 = arith.constant 0 : i32
    %c0_i32_0 = arith.constant 0 : i32
    return %arg0, %c0_i32 : i32, i32
  }
}

</mosaic_0001>

<bundles_post_ra>
// kernel: tpu_custom_call.1
= control target key start
LH: loop header
LB: loop body
LE: loop exit
PB: predicated region body
PF: predicated region fallthrough
CT: control target
= control target key end

     0   :  { %7 = vsyncpa [#allocation3], 0  ;;  %s199_s0 = inlined_call_operand.hbm [shape: f32[8,256], index: 0, kind: input, shape index: {}]   ;;  %s200_s1 = inlined_call_operand.hbm [shape: f32[1,256], index: 1, kind: input, shape index: {}]   ;;  %s201_s2 = inlined_call_operand.hbm [shape: f32[8,256], index: 2, kind: output, shape index: {}]  }
   0x1   :  { %8 = vsyncpa [#allocation6], 0 }
   0x2   :  { %9 = vsyncpa [#allocation4], 0  ;;  %s145_s9 = smov [#allocation2]   ;;  %s146_s11 = smov [#allocation5]  }
   0x3   :  { %s16_s10 = sshll.u32 %s145_s9, 4  ;;  %s26_s12 = sshll.u32 %s146_s11, 4  ;;  %s17_s10 = int_to_ptr.vmem [resolvable:$true] %s16_s10  ;;  %s27_s12 = int_to_ptr.vmem [resolvable:$true] %s26_s12 }
   0x4   :  { %s73_s15 = scalar_lea.hbm %s199_s0, 256 }
   0x5   :  { %p74_p0 = scmp.ne.s32.totalorder %s199_s0, %s73_s15  ;;  %p77_p1 = scmp.lt.u32.totalorder %s73_s15, %s199_s0 }
   0x7   :  { %p79_p2 = pnand %p77_p1, %p74_p0 }
   0x9   :  { %82 = shalt.err (!%p79_p2)
}
   0xa   :  { %s83_s20 = scalar_lea.vmem %s17_s10, 256  ;;  %p88_p4 = scmp.lt.s32.totalorder %s17_s10, %s17_s10 }
   0xb   :  { %p84_p3 = scmp.ne.s32.totalorder %s17_s10, %s83_s20  ;;  %p89_p5 = scmp.lt.s32.totalorder %s83_s20, %s83_s20 }
   0xd   :  { %p90_p6 = por %p89_p5, %p88_p4 }
   0xf   :  { %p91_p7 = pnand %p90_p6, %p84_p3 }
  0x11   :  { %94 = shalt.err (!%p91_p7)
}
  0x12   :  { %19 = dma.hbm_to_vmem [thread:$0]  %s199_s0, 256, %s17_s10, [#allocation3]  }
  0x13   :  { %s95_s25 = scalar_lea.hbm %s200_s1, 32 }
  0x14   :  { %p96_p8 = scmp.ne.s32.totalorder %s200_s1, %s95_s25  ;;  %p99_p9 = scmp.lt.u32.totalorder %s95_s25, %s200_s1 }
  0x16   :  { %p101_p10 = pnand %p99_p9, %p96_p8 }
  0x18   :  { %104 = shalt.err (!%p101_p10)
}
  0x19   :  { %s105_s30 = scalar_lea.vmem %s27_s12, 32  ;;  %p110_p12 = scmp.lt.s32.totalorder %s27_s12, %s27_s12 }
  0x1a   :  { %p106_p11 = scmp.ne.s32.totalorder %s27_s12, %s105_s30  ;;  %p111_p13 = scmp.lt.s32.totalorder %s105_s30, %s105_s30 }
  0x1c   :  { %p112_p0 = por %p111_p13, %p110_p12 }
  0x1e   :  { %p113_p1 = pnand %p112_p0, %p106_p11 }
  0x20   :  { %116 = shalt.err (!%p113_p1)
}
  0x21   :  { %29 = dma.hbm_to_vmem [thread:$0]  %s200_s1, 32, %s27_s12, [#allocation6]  }
  0x22   :  { %139 = dma.done.wait [#allocation3], 256  }
  0x23   :  { %140 = vsyncadd [#allocation3], 4294967040 }
  0x24   :  { %141 = dma.done.wait [#allocation6], 32  }
  0x25   :  { %142 = vsyncadd [#allocation6], 4294967264  ;;  %v40_v0 = vlaneseq  ;;  %v36_v4 = vld [vmem:[#allocation2] sm:$0xff]  ;;  %v38_v5 = vld [vmem:[#allocation5] sm:$0x3]  ;;  %s147_s4 = smov [#allocation7]  }
  0x26   :  { %v37_v6 = vld [vmem:[#allocation2 + $0x8] sm:$0xff]  ;;  %s60_s5 = sshll.u32 %s147_s4, 4  ;;  %s61_s5 = int_to_ptr.vmem [resolvable:$true] %s60_s5 }
  0x27   :  { %v41_v1 = vshrl.u32 %v40_v0, 7  ;;  %s117_s1 = scalar_lea.vmem %s61_s5, 256  ;;  %p122_p3 = scmp.lt.s32.totalorder %s61_s5, %s61_s5 }
  0x28   :  { %p118_p2 = scmp.ne.s32.totalorder %s61_s5, %s117_s1  ;;  %p123_p4 = scmp.lt.s32.totalorder %s117_s1, %s117_s1 }
  0x29   :  { %v42_v2 = vsub.s32 0, %v41_v1  ;;  %v46_v3 = vsub.s32 1, %v41_v1 }
  0x2a   :  { %p124_p5 = por %p123_p4, %p122_p3 }
  0x2b   :  { %v43_v7 = vrot.slane %v38_v5, %v42_v2  ;;  %v47_v8 = vrot.slane %v38_v5, %v46_v3 }
  0x2c   :  { %p125_p6 = pnand %p124_p5, %p118_p2 }
  0x2d   :  { %v50_v9 = vadd.f32 %v43_v7, %v36_v4  ;;  %v51_v10 = vadd.f32 %v47_v8, %v37_v6 }
  0x2f   :  { %52 = vst [vmem:[#allocation7] sm:$0xff] %v50_v9  ;;  %53 = vst [vmem:[#allocation7 + $0x8] sm:$0xff] %v51_v10 }
  0x30   :  { %128 = shalt.err (!%p125_p6)
}
  0x31   :  { %s129_s8 = scalar_lea.hbm %s201_s2, 256 }
  0x32   :  { %p130_p7 = scmp.ne.s32.totalorder %s201_s2, %s129_s8  ;;  %p133_p8 = scmp.lt.u32.totalorder %s129_s8, %s201_s2 }
  0x34   :  { %p135_p9 = pnand %p133_p8, %p130_p7 }
  0x36   :  { %138 = shalt.err (!%p135_p9)
}
  0x37   :  { %63 = dma.vmem_to_hbm [thread:$0]  %s61_s5, 256, %s201_s2, [#allocation4]  }
  0x38   :  { %143 = dma.done.wait [#allocation4], 256  }
  0x39   :  { %144 = vsyncadd [#allocation4], 4294967040 }
  0x3a   :  { %67 = vsyncpa [#allocation3], 1 }
  0x3b   :  { %68 = vsyncpa [#allocation6], 1 }
  0x3c   :  { %69 = vsyncpa [#allocation4], 1 }

</bundles_post_ra>
